<compile_context>
chip_gen: v6e
topology: v6e:2x2x1
jax: 0.10.0
libtpu: 0.0.40
codegen_flags: <defaults>
</compile_context>

<pallas_src>
import functools
from dataclasses import dataclass
from typing import Optional

import jax
import jax.numpy as jnp
from jax import lax
from jax.experimental import pallas as pl
from jax.experimental.pallas import tpu as pltpu

NEG_INF = float("-inf")   # plain Python float -> no captured jax array constants


@dataclass
class SequenceClassifierGlitterOutput:
    selected_neighbors: Optional[jnp.ndarray]
    selected_ranks: Optional[jnp.ndarray] = None
    teacher_logits: Optional[jnp.ndarray] = None

    @property
    def is_empty(self):
        return self.selected_neighbors is None or self.selected_neighbors.size == 0

    @property
    def has_selected_ranks(self):
        return self.selected_ranks is not None and self.selected_ranks.size > 0


def _round_up(x, m):
    return ((x + m - 1) // m) * m


def _make_glitter_kernel(temperature: float, augment_rank: int,
                         n_neighbors: int, num_classes: int, groups_pad: int):
    """Fused KL/MSE distance + iterative scatter-max selection.

    Layout: neighbors on sublanes, classes / group-ids on lanes.  Every op is
    plain VPU/EUP elementwise work plus lane/sublane reductions -> no transposes,
    no padding, robust lowering at any small N / C / G.
    """
    inv_t = 1.0 / float(temperature)
    N, C, Gp = int(n_neighbors), int(num_classes), int(groups_pad)
    rank = int(augment_rank)
    sentinel = N   # torch_scatter convention: "no member" index == input size

    def kernel(stu_ref, tea_ref, grp_ref, selidx_ref, seldist_ref):
        stu = stu_ref[...].astype(jnp.float32)            # [N, C]
        tea = tea_ref[...].astype(jnp.float32)            # [N, C]

        if C == 1:
            # MSELoss(reduction='none') on flattened logits
            diff = tea - stu
            dist = diff * diff                             # [N, 1]
        else:
            # KLDivLoss(log_softmax(stu/T), softmax(tea/T)).sum(-1), refactored:
            #   KL = (1/Zt) * sum_c e_t * ((t - tm) - (s - sm)) + log(Zs / Zt)
            # -> no [N, C] divide, no log_p/log_q temporaries, a single log.
            s = stu * inv_t
            t = tea * inv_t
            sm = jnp.max(s, axis=-1, keepdims=True)        # [N, 1]
            tm = jnp.max(t, axis=-1, keepdims=True)
            se = jnp.exp(s - sm)
            te = jnp.exp(t - tm)
            sz = jnp.sum(se, axis=-1, keepdims=True)       # [N, 1]
            tz = jnp.sum(te, axis=-1, keepdims=True)
            num = jnp.sum(te * ((t - tm) - (s - sm)), axis=-1, keepdims=True)
            inv_tz = 1.0 / tz                              # exact (ties / ==0 test)
            dist = num * inv_tz + jnp.log(sz * inv_tz)     # [N, 1]
            # TODO(synk): for large C (>= ~64) do sz/tz/num as ones-vector matmuls
            # on the idle MXU instead of lane reductions.

        # ---- iterative scatter_max selection: groups on lanes, neighbors on sublanes
        gid = lax.broadcasted_iota(jnp.int32, (N, Gp), 1)   # lane    = group id
        row = lax.broadcasted_iota(jnp.int32, (N, Gp), 0)   # sublane = neighbor id
        member = jnp.broadcast_to(grp_ref[...], (N, Gp)) == gid
        dmat0 = jnp.where(member, jnp.broadcast_to(dist, (N, Gp)), NEG_INF)
        # `member`/`gid` are NOT kept alive across rounds (live-range trim).

        def select_round(dmat, apply_gate):
            mx = jnp.max(dmat, axis=0, keepdims=True)                 # [1, Gp]
            is_max = (dmat == mx) & jnp.isfinite(mx)                  # no `member` needed
            idx = jnp.min(jnp.where(is_max, row, sentinel),           # lowest idx on ties
                          axis=0, keepdims=True)                      # [1, Gp]
            chosen = row == idx
            if apply_gate:
                # torch filters exhausted groups (max == 0 or +/-inf) before the
                # -inf write, but only for rounds j > 0.
                chosen = chosen & (mx != 0.0) & jnp.logical_not(jnp.isinf(mx))
            dmat = jnp.where(chosen, NEG_INF, dmat)
            return dmat, mx, idx

        dmat, mx, idx = select_round(dmat0, apply_gate=False)         # round j == 0

        if rank > 1:
            def round_fn(_, carry):
                d, _, _ = carry
                return select_round(d, apply_gate=True)
            _, mx, idx = lax.fori_loop(1, rank, round_fn, (dmat, mx, idx),
                                       unroll=rank <= 4)

        # lane-dense (128-wide) unmasked stores; wrapper slices the first G lanes.
        selidx_ref[...] = idx
        seldist_ref[...] = mx

    return kernel


@functools.partial(
    jax.jit,
    static_argnames=("temperature", "augment_rank", "num_groups", "num_aug"))
def _glitter_device_forward(teacher_flat, stu_logits, nn_mask, example_indices,
                            augmented_indices, *, temperature, augment_rank,
                            num_groups, num_aug):
    """Single fused dispatch: teacher-logit gather + Pallas distance/selection."""
    N, C = stu_logits.shape
    Gp = max(128, _round_up(num_groups, 128))

    # Teacher-logit gather, fused into the same XLA program as the kernel (no
    # separate eager dispatch, no pre-kernel host sync).
    # TODO(synk): fold this gather fully into the kernel (PrefetchScalarGridSpec of
    # the flat row indices + ANY-space teacher + per-row make_async_copy); that is
    # only a win once C is wide enough (~>=128) to amortize per-row DMA overhead,
    # so for few-class heads the fused XLA gather is kept.
    flat_idx = example_indices[nn_mask] * num_aug + augmented_indices
    tea_logits = teacher_flat[flat_idx]                      # [N, C]
    grp = nn_mask.astype(jnp.int32).reshape(N, 1)            # [N, 1]

    kernel = _make_glitter_kernel(temperature, augment_rank, N, C, Gp)
    cost = pl.CostEstimate(
        flops=int(10 * N * C + 8 * augment_rank * N * Gp),
        transcendentals=int((2 * C + 1) * N) if C > 1 else 0,
        bytes_accessed=int((2 * N * C + N) * 4 + 2 * Gp * 4),
    )

    sel_idx, sel_dist = pl.pallas_call(
        kernel,
        grid=(1,),
        in_specs=[
            pl.BlockSpec((N, C), lambda i: (0, 0)),   # student logits (native dtype)
            pl.BlockSpec((N, C), lambda i: (0, 0)),   # gathered teacher logits
            pl.BlockSpec((N, 1), lambda i: (0, 0)),   # group id per neighbor
        ],
        out_specs=(
            pl.BlockSpec((1, Gp), lambda i: (0, 0)),
            pl.BlockSpec((1, Gp), lambda i: (0, 0)),
        ),
        out_shape=(
            jax.ShapeDtypeStruct((1, Gp), jnp.int32),
            jax.ShapeDtypeStruct((1, Gp), jnp.float32),
        ),
        compiler_params=pltpu.CompilerParams(dimension_semantics=("arbitrary",)),
        cost_estimate=cost,
    )(stu_logits, tea_logits, grp)
    # TODO(synk): for very large N, tile N over a "parallel" grid axis with a
    # per-group running top-`augment_rank` carry in VMEM scratch (uses both v7x
    # TensorCores and bounds VMEM); unnecessary at these shapes.

    return sel_idx[0, :num_groups], sel_dist[0, :num_groups], tea_logits


class GlitterForSequenceClassification:
    """JAX/Pallas port of the PyTorch module (forward pass only)."""

    def __init__(self, teacher_logits, temperature, num_augments):
        # register_buffer('teacher_logits', teacher_logits[:, 1:]); pre-flattened
        # once so the per-step gather is a single row lookup.
        tl = teacher_logits[:, 1:]                               # [E, A, C]
        self.num_aug = int(tl.shape[1])
        self.num_classes = int(tl.shape[2])
        self.teacher_flat = tl.reshape(tl.shape[0] * self.num_aug, self.num_classes)
        self.temperature = float(temperature)
        self.num_augments = num_augments

    def __call__(self, stu_logits, augment_rank, nn_mask, example_indices,
                 augmented_indices=None, nn_ranks=None):
        assert example_indices is not None
        augment_rank = int(augment_rank)
        assert augment_rank >= 1

        N = int(stu_logits.shape[0])
        if N == 0:
            return SequenceClassifierGlitterOutput(
                None, None,
                teacher_logits=jnp.zeros((0, self.num_classes),
                                         self.teacher_flat.dtype))

        # static group count (no device->host sync before the launch)
        num_groups = int(example_indices.shape[0])

        sel_idx, sel_dist, tea_logits = _glitter_device_forward(
            self.teacher_flat, stu_logits, nn_mask, example_indices,
            augmented_indices,
            temperature=self.temperature, augment_rank=augment_rank,
            num_groups=num_groups, num_aug=self.num_aug)

        # Host-side dynamic-shape finalize (mirrors torch's data-dependent output
        # length; this sync is inherent to the module's semantics).
        if augment_rank > 1:
            keep = (sel_dist != 0.0) & jnp.logical_not(jnp.isinf(sel_dist))
        else:
            keep = jnp.logical_not(jnp.isneginf(sel_dist))  # drop empty/padded groups
        sel_idx = sel_idx[keep]

        selected_ranks = nn_ranks[sel_idx] if nn_ranks is not None else None
        return SequenceClassifierGlitterOutput(
            selected_neighbors=sel_idx,
            selected_ranks=selected_ranks,
            teacher_logits=tea_logits[sel_idx])


if __name__ == "__main__":
    key = jax.random.PRNGKey(0)
    k1, k2, k3 = jax.random.split(key, 3)

    # small deterministic synthetic problem
    E, A, C = 4, 4, 3          # examples, augmentations, classes
    G = 4                      # groups (original examples in the current batch)
    per_group = 4
    N = G * per_group          # total candidate neighbors
    temperature = 2.0
    num_augments = A
    augment_rank = 2

    teacher_logits_full = jax.random.normal(k1, (E, A + 1, C), dtype=jnp.float32)
    stu_logits = jax.random.normal(k2, (N, C), dtype=jnp.float32)
    nn_mask = jnp.repeat(jnp.arange(G, dtype=jnp.int32), per_group)       # [N] group ids
    example_indices = jnp.arange(G, dtype=jnp.int32)                      # group -> example row
    augmented_indices = jax.random.randint(k3, (N,), 0, A).astype(jnp.int32)
    nn_ranks = (jnp.arange(N, dtype=jnp.int32) % per_group)

    model = GlitterForSequenceClassification(teacher_logits_full, temperature, num_augments)
    out = model(stu_logits, augment_rank, nn_mask, example_indices,
                augmented_indices=augmented_indices, nn_ranks=nn_ranks)

    jax.block_until_ready(out.selected_neighbors)
    if out.selected_ranks is not None:
        jax.block_until_ready(out.selected_ranks)
    jax.block_until_ready(out.teacher_logits)
    print("KERNEL_OK")
</pallas_src>

<mosaic_0001>
module attributes {stable_mosaic.version = 11 : i64} {
  func.func @kernel(%arg0: i32, %arg1: memref<16x3xf32, #tpu.memory_space<vmem>>, %arg2: memref<16x3xf32, #tpu.memory_space<vmem>>, %arg3: memref<16x1xi32, #tpu.memory_space<vmem>>, %arg4: memref<1x128xi32, #tpu.memory_space<vmem>>, %arg5: memref<1x128xf32, #tpu.memory_space<vmem>>) attributes {dimension_semantics = [#tpu.dimension_semantics<arbitrary>], iteration_bounds = array<i64: 1>, scalar_prefetch = 0 : i64, scratch_operands = 0 : i64, tpu.core_type = #tpu.core_type<tc>, window_params = [{pipeline_mode = #tpu.pipeline_mode<synchronous>, transform_indices = @transform_0, window_bounds = array<i64: 16, 3>}, {pipeline_mode = #tpu.pipeline_mode<synchronous>, transform_indices = @transform_1, window_bounds = array<i64: 16, 3>}, {pipeline_mode = #tpu.pipeline_mode<synchronous>, transform_indices = @transform_2, window_bounds = array<i64: 16, 1>}, {pipeline_mode = #tpu.pipeline_mode<synchronous>, transform_indices = @transform_3, window_bounds = array<i64: 1, 128>}, {pipeline_mode = #tpu.pipeline_mode<synchronous>, transform_indices = @transform_4, window_bounds = array<i64: 1, 128>}]} {
    %c0 = arith.constant 0 : index
    %c0_0 = arith.constant 0 : index
    %0 = vector.load %arg1[%c0, %c0_0] : memref<16x3xf32, #tpu.memory_space<vmem>>, vector<16x3xf32>
    %c0_1 = arith.constant 0 : index
    %c0_2 = arith.constant 0 : index
    %1 = vector.load %arg2[%c0_1, %c0_2] : memref<16x3xf32, #tpu.memory_space<vmem>>, vector<16x3xf32>
    %cst = arith.constant 5.000000e-01 : f32
    %2 = vector.broadcast %cst : f32 to vector<16x3xf32>
    %3 = arith.mulf %0, %2 : vector<16x3xf32>
    %cst_3 = arith.constant 5.000000e-01 : f32
    %4 = vector.broadcast %cst_3 : f32 to vector<16x3xf32>
    %5 = arith.mulf %1, %4 : vector<16x3xf32>
    %cst_4 = arith.constant dense<0xFF800000> : vector<16xf32>
    %6 = vector.multi_reduction <maximumf>, %3, %cst_4 [1] : vector<16x3xf32> to vector<16xf32>
    %7 = vector.shape_cast %6 : vector<16xf32> to vector<16x1xf32>
    %cst_5 = arith.constant dense<0xFF800000> : vector<16xf32>
    %8 = vector.multi_reduction <maximumf>, %5, %cst_5 [1] : vector<16x3xf32> to vector<16xf32>
    %9 = vector.shape_cast %8 : vector<16xf32> to vector<16x1xf32>
    %10 = vector.broadcast %7 : vector<16x1xf32> to vector<16x3xf32>
    %11 = arith.subf %3, %10 : vector<16x3xf32>
    %12 = math.exp %11 : vector<16x3xf32>
    %13 = vector.broadcast %9 : vector<16x1xf32> to vector<16x3xf32>
    %14 = arith.subf %5, %13 : vector<16x3xf32>
    %15 = math.exp %14 : vector<16x3xf32>
    %cst_6 = arith.constant dense<0.000000e+00> : vector<16xf32>
    %16 = vector.multi_reduction <add>, %12, %cst_6 [1] : vector<16x3xf32> to vector<16xf32>
    %17 = vector.shape_cast %16 : vector<16xf32> to vector<16x1xf32>
    %cst_7 = arith.constant dense<0.000000e+00> : vector<16xf32>
    %18 = vector.multi_reduction <add>, %15, %cst_7 [1] : vector<16x3xf32> to vector<16xf32>
    %19 = vector.shape_cast %18 : vector<16xf32> to vector<16x1xf32>
    %20 = vector.broadcast %9 : vector<16x1xf32> to vector<16x3xf32>
    %21 = arith.subf %5, %20 : vector<16x3xf32>
    %22 = vector.broadcast %7 : vector<16x1xf32> to vector<16x3xf32>
    %23 = arith.subf %3, %22 : vector<16x3xf32>
    %24 = arith.subf %21, %23 : vector<16x3xf32>
    %25 = arith.mulf %15, %24 : vector<16x3xf32>
    %cst_8 = arith.constant dense<0.000000e+00> : vector<16xf32>
    %26 = vector.multi_reduction <add>, %25, %cst_8 [1] : vector<16x3xf32> to vector<16xf32>
    %27 = vector.shape_cast %26 : vector<16xf32> to vector<16x1xf32>
    %cst_9 = arith.constant 1.000000e+00 : f32
    %28 = vector.broadcast %cst_9 : f32 to vector<16x1xf32>
    %29 = arith.divf %28, %19 : vector<16x1xf32>
    %30 = arith.mulf %27, %29 : vector<16x1xf32>
    %31 = arith.mulf %17, %29 : vector<16x1xf32>
    %32 = math.log %31 : vector<16x1xf32>
    %33 = arith.addf %30, %32 : vector<16x1xf32>
    %34 = tpu.iota {dimensions = array<i32: 1>} : vector<16x128xi32>
    %35 = tpu.iota {dimensions = array<i32: 0>} : vector<16x128xi32>
    %c0_10 = arith.constant 0 : index
    %c0_11 = arith.constant 0 : index
    %36 = vector.load %arg3[%c0_10, %c0_11] : memref<16x1xi32, #tpu.memory_space<vmem>>, vector<16x1xi32>
    %37 = vector.shape_cast %36 : vector<16x1xi32> to vector<16x1xi32>
    %38 = vector.broadcast %37 : vector<16x1xi32> to vector<16x128xi32>
    %39 = arith.cmpi eq, %38, %34 : vector<16x128xi32>
    %40 = vector.shape_cast %33 : vector<16x1xf32> to vector<16x1xf32>
    %41 = vector.broadcast %40 : vector<16x1xf32> to vector<16x128xf32>
    %cst_12 = arith.constant 0xFF800000 : f32
    %42 = vector.broadcast %cst_12 : f32 to vector<16x128xf32>
    %43 = arith.select %39, %41, %42 : vector<16x128xi1>, vector<16x128xf32>
    %cst_13 = arith.constant dense<0xFF800000> : vector<128xf32>
    %44 = vector.multi_reduction <maximumf>, %43, %cst_13 [0] : vector<16x128xf32> to vector<128xf32>
    %45 = vector.shape_cast %44 : vector<128xf32> to vector<1x128xf32>
    %46 = vector.broadcast %45 : vector<1x128xf32> to vector<16x128xf32>
    %47 = arith.cmpf oeq, %43, %46 : vector<16x128xf32>
    %48 = tpu.weird %45 : vector<1x128xf32> -> vector<1x128xi1>
    %cst_14 = arith.constant dense<true> : vector<1x128xi1>
    %49 = arith.xori %48, %cst_14 : vector<1x128xi1>
    %50 = vector.broadcast %49 : vector<1x128xi1> to vector<16x128xi1>
    %51 = arith.andi %47, %50 : vector<16x128xi1>
    %c16_i32 = arith.constant 16 : i32
    %52 = vector.broadcast %c16_i32 : i32 to vector<16x128xi32>
    %53 = arith.select %51, %35, %52 : vector<16x128xi1>, vector<16x128xi32>
    %cst_15 = arith.constant dense<2147483647> : vector<128xi32>
    %54 = vector.multi_reduction <minsi>, %53, %cst_15 [0] : vector<16x128xi32> to vector<128xi32>
    %55 = vector.shape_cast %54 : vector<128xi32> to vector<1x128xi32>
    %56 = vector.broadcast %55 : vector<1x128xi32> to vector<16x128xi32>
    %57 = arith.cmpi eq, %35, %56 : vector<16x128xi32>
    %cst_16 = arith.constant 0xFF800000 : f32
    %58 = vector.broadcast %cst_16 : f32 to vector<16x128xf32>
    %59 = arith.select %57, %58, %43 : vector<16x128xi1>, vector<16x128xf32>
    %c0_i32 = arith.constant 0 : i32
    %cst_17 = arith.constant dense<0xFF800000> : vector<128xf32>
    %60 = vector.multi_reduction <maximumf>, %59, %cst_17 [0] : vector<16x128xf32> to vector<128xf32>
    %61 = vector.shape_cast %60 : vector<128xf32> to vector<1x128xf32>
    %62 = vector.broadcast %61 : vector<1x128xf32> to vector<16x128xf32>
    %63 = arith.cmpf oeq, %59, %62 : vector<16x128xf32>
    %64 = tpu.weird %61 : vector<1x128xf32> -> vector<1x128xi1>
    %cst_18 = arith.constant dense<true> : vector<1x128xi1>
    %65 = arith.xori %64, %cst_18 : vector<1x128xi1>
    %66 = vector.broadcast %65 : vector<1x128xi1> to vector<16x128xi1>
    %67 = arith.andi %63, %66 : vector<16x128xi1>
    %c16_i32_19 = arith.constant 16 : i32
    %68 = vector.broadcast %c16_i32_19 : i32 to vector<16x128xi32>
    %69 = arith.select %67, %35, %68 : vector<16x128xi1>, vector<16x128xi32>
    %cst_20 = arith.constant dense<2147483647> : vector<128xi32>
    %70 = vector.multi_reduction <minsi>, %69, %cst_20 [0] : vector<16x128xi32> to vector<128xi32>
    %71 = vector.shape_cast %70 : vector<128xi32> to vector<1x128xi32>
    %72 = vector.broadcast %71 : vector<1x128xi32> to vector<16x128xi32>
    %73 = arith.cmpi eq, %35, %72 : vector<16x128xi32>
    %cst_21 = arith.constant 0.000000e+00 : f32
    %74 = vector.broadcast %cst_21 : f32 to vector<1x128xf32>
    %75 = arith.cmpf one, %61, %74 : vector<1x128xf32>
    %76 = vector.broadcast %75 : vector<1x128xi1> to vector<16x128xi1>
    %77 = arith.andi %73, %76 : vector<16x128xi1>
    %78 = math.absf %61 : vector<1x128xf32>
    %cst_22 = arith.constant 0x7F800000 : f32
    %79 = vector.broadcast %cst_22 : f32 to vector<1x128xf32>
    %80 = arith.cmpf oeq, %78, %79 : vector<1x128xf32>
    %cst_23 = arith.constant dense<true> : vector<1x128xi1>
    %81 = arith.xori %80, %cst_23 : vector<1x128xi1>
    %82 = vector.broadcast %81 : vector<1x128xi1> to vector<16x128xi1>
    %83 = arith.andi %77, %82 : vector<16x128xi1>
    %cst_24 = arith.constant 0xFF800000 : f32
    %84 = vector.broadcast %cst_24 : f32 to vector<16x128xf32>
    %85 = arith.select %83, %84, %59 : vector<16x128xi1>, vector<16x128xf32>
    %c0_25 = arith.constant 0 : index
    %c0_26 = arith.constant 0 : index
    %86 = vector.load %arg4[%c0_25, %c0_26] : memref<1x128xi32, #tpu.memory_space<vmem>>, vector<1x128xi32>
    tpu.vector_store %arg4[%c0_25, %c0_26], %71 {strides = array<i32>} : memref<1x128xi32, #tpu.memory_space<vmem>>, vector<1x128xi32>,
    %c0_27 = arith.constant 0 : index
    %c0_28 = arith.constant 0 : index
    %87 = vector.load %arg5[%c0_27, %c0_28] : memref<1x128xf32, #tpu.memory_space<vmem>>, vector<1x128xf32>
    tpu.vector_store %arg5[%c0_27, %c0_28], %61 {strides = array<i32>} : memref<1x128xf32, #tpu.memory_space<vmem>>, vector<1x128xf32>,
    return
  }
  func.func @transform_0(%arg0: i32) -> (i32, i32) {
    %c0_i32 = arith.constant 0 : i32
    %c0_i32_0 = arith.constant 0 : i32
    %c0_i32_1 = arith.constant 0 : i32
    return %c0_i32, %c0_i32_0 : i32, i32
  }
  func.func @transform_1(%arg0: i32) -> (i32, i32) {
    %c0_i32 = arith.constant 0 : i32
    %c0_i32_0 = arith.constant 0 : i32
    %c0_i32_1 = arith.constant 0 : i32
    return %c0_i32, %c0_i32_0 : i32, i32
  }
  func.func @transform_2(%arg0: i32) -> (i32, i32) {
    %c0_i32 = arith.constant 0 : i32
    %c0_i32_0 = arith.constant 0 : i32
    %c0_i32_1 = arith.constant 0 : i32
    return %c0_i32, %c0_i32_0 : i32, i32
  }
  func.func @transform_3(%arg0: i32) -> (i32, i32) {
    %c0_i32 = arith.constant 0 : i32
    %c0_i32_0 = arith.constant 0 : i32
    %c0_i32_1 = arith.constant 0 : i32
    return %c0_i32, %c0_i32_0 : i32, i32
  }
  func.func @transform_4(%arg0: i32) -> (i32, i32) {
    %c0_i32 = arith.constant 0 : i32
    %c0_i32_0 = arith.constant 0 : i32
    %c0_i32_1 = arith.constant 0 : i32
    return %c0_i32, %c0_i32_0 : i32, i32
  }
}

</mosaic_0001>

<bundles_post_ra>
// kernel: _glitter_device_forward.1
= control target key start
LH: loop header
LB: loop body
LE: loop exit
PB: predicated region body
PF: predicated region fallthrough
CT: control target
= control target key end

     0   :  { %vm24_vm0 = vcmask 23552   ;;  %v192_v12 = vmov 0   ;;  %v85_v49 = vlaneseq  ;;  %vm193_vm6 = vmmov 1   ;;  %s255_s1 = inlined_call_operand.vmem [shape: f32[16,3], index: 1, kind: input, shape index: {}]   ;;  %s256_s0 = inlined_call_operand.vmem [shape: f32[16,3], index: 0, kind: input, shape index: {}]   ;;  %s257_s2 = inlined_call_operand.vmem [shape: s32[16,1], index: 2, kind: input, shape index: {}]   ;;  %s258_s4 = inlined_call_operand.vmem [shape: f32[1,128], index: 4, kind: output, shape index: {1}]   ;;  %s259_s3 = inlined_call_operand.vmem [shape: s32[1,128], index: 3, kind: output, shape index: {0}]  }
   0x1   :  { %v18_v0 = vld [vmem:[%s255_s1] sm:$0xff]  ;;  %v19_v2 = vld [vmem:[%s255_s1 + $0x8] sm:$0xff]  ;;  %174 = vset.pattern.permute.xlu0 %v192_v12  ;;  %175 = vset.pattern.permute.xlu1 %v192_v12 }
   0x2   :  { %v16_v1 = vld [vmem:[%s256_s0] sm:$0xff]  ;;  %v22_v3 = vmul.f32 0.5, %v18_v0  ;;  %v23_v5 = vmul.f32 0.5, %v19_v2  ;;  %v17_v6 = vld [vmem:[%s256_s0 + $0x8] sm:$0xff]  ;;  %v86_v54 = vand.u32 127, %v85_v49 }
   0x3   :  { %v20_v4 = vmul.f32 0.5, %v16_v1  ;;  %v21_v7 = vmul.f32 0.5, %v17_v6  ;;  %v91_v39 = vld [vmem:[%s257_s2 + $0x8] sm:$0xff]  ;;  %v90_v40 = vld [vmem:[%s257_s2] sm:$0xff]  ;;  %v88_v6 = vshrl.u32 %v85_v49, 7 }
   0x4   :  { %v31_v8 = vsel %vm24_vm0, %v22_v3, -inf  ;;  %v34_v10 = vsel %vm24_vm0, %v23_v5, -inf }
   0x5   :  { %v25_v9 = vsel %vm24_vm0, %v20_v4, -inf  ;;  %32 = vmax.xlane.f32.xlu0 %v31_v8  ;;  %v28_v11 = vsel %vm24_vm0, %v21_v7, -inf }
   0x6   :  { %26 = vmax.xlane.f32.xlu1 %v25_v9  ;;  %v89_v9 = vadd.s32 8, %v88_v6 }
   0x9   :  { %35 = vmax.xlane.f32.xlu0 %v34_v10 }
   0xa   :  { %29 = vmax.xlane.f32.xlu1 %v28_v11 }
  0x8e   :  { %v33_v13 = vpop.xlane.xlu0 %32 }
  0x8f   :  { %v27_v14 = vpop.xlane.xlu1 %26  ;;  %v43_v15 = vsub.f32 %v22_v3, %v33_v13 }
  0x90   :  { %v37_v16 = vsub.f32 %v20_v4, %v27_v14 }
  0x91   :  { %v45_v17 = vmul.f32 1.442695, %v43_v15 }
  0x92   :  { %v39_v18 = vmul.f32 1.442695, %v37_v16  ;;  %v36_v19 = vpop.xlane.xlu0 %35  ;;  %v61_v28 = vsub.f32 %v43_v15, %v37_v16 }
  0x93   :  { %v30_v20 = vpop.xlane.xlu1 %29  ;;  %176 = vpow2.f32 %v45_v17  ;;  %v44_v21 = vsub.f32 %v23_v5, %v36_v19 }
  0x94   :  { %v38_v22 = vsub.f32 %v21_v7, %v30_v20  ;;  %178 = vpow2.f32 %v39_v18 }
  0x95   :  { %v47_v23 = vmul.f32 1.442695, %v44_v21 }
  0x96   :  { %v41_v24 = vmul.f32 1.442695, %v38_v22  ;;  %v62_v34 = vsub.f32 %v44_v21, %v38_v22 }
  0x97   :  { %180 = vpow2.f32 %v47_v23 }
  0x98   :  { %182 = vpow2.f32 %v41_v24 }
  0xa0   :  { %v177_v25 = vpop.eup %176 }
  0xa1   :  { %v179_v26 = vpop.eup %178  ;;  %v55_v27 = vsel %vm24_vm0, %v177_v25, 0.0  ;;  %v63_v33 = vmul.f32 %v177_v25, %v61_v28 }
  0xa2   :  { %56 = vadd.xlane.f32.xlu0 %v55_v27  ;;  %v49_v29 = vsel %vm24_vm0, %v179_v26, 0.0 }
  0xa3   :  { %v65_v36 = vsel %vm24_vm0, %v63_v33, 0.0 }
  0xa4   :  { %v181_v30 = vpop.eup %180 }
  0xa5   :  { %v183_v31 = vpop.eup %182  ;;  %v58_v32 = vsel %vm24_vm0, %v181_v30, 0.0  ;;  %v64_v37 = vmul.f32 %v181_v30, %v62_v34 }
  0xa6   :  { %59 = vadd.xlane.f32.xlu1 %v58_v32  ;;  %50 = vadd.xlane.f32.xlu0 %v49_v29  ;;  %v52_v35 = vsel %vm24_vm0, %v183_v31, 0.0 }
  0xa7   :  { %v68_v38 = vsel %vm24_vm0, %v64_v37, 0.0 }
  0xaa   :  { %66 = vadd.xlane.f32.xlu0 %v65_v36  ;;  %53 = vadd.xlane.f32.xlu1 %v52_v35 }
  0xae   :  { %69 = vadd.xlane.f32.xlu1 %v68_v38 }
  0xbf   :  { %96 = vperm.xlu1 %175, %v91_v39  }
  0xc0   :  { %93 = vperm.xlu0 %174, %v90_v40  }
 0x12b   :  { %v57_v41 = vpop.xlane.xlu0 %56 }
 0x12c   :  { %184 = vrcp.f32 %v57_v41 }
 0x12f   :  { %v60_v42 = vpop.xlane.xlu1 %59  ;;  %v51_v44 = vpop.xlane.xlu0 %50 }
 0x130   :  { %186 = vrcp.f32 %v60_v42 }
 0x133   :  { %v54_v47 = vpop.xlane.xlu1 %53  ;;  %v67_v50 = vpop.xlane.xlu0 %66 }
 0x137   :  { %v70_v51 = vpop.xlane.xlu1 %69 }
 0x139   :  { %v185_v43 = vpop.eup %184 }
 0x13a   :  { %v77_v45 = vmul.f32 %v185_v43, %v51_v44  ;;  %v75_v55 = vmul.f32 %v185_v43, %v67_v50 }
 0x13b   :  { %v94_v56 = vpop.permute.xlu0 %93  ;;  %v97_v57 = vpop.permute.xlu1 %96 }
 0x13c   :  { %188 = vlog2.f32 %v77_v45  ;;  %vm98_vm1 = vcmp.eq.s32.totalorder %v94_v56, %v86_v54  ;;  %vm99_vm2 = vcmp.eq.s32.totalorder %v97_v57, %v86_v54 }
 0x13d   :  { %v187_v46 = vpop.eup %186 }
 0x13e   :  { %v78_v48 = vmul.f32 %v187_v46, %v54_v47  ;;  %v76_v61 = vmul.f32 %v187_v46, %v70_v51 }
 0x140   :  { %190 = vlog2.f32 %v78_v48 }
 0x149   :  { %v189_v52 = vpop.eup %188 }
 0x14a   :  { %v80_v53 = vmul.f32 0.6931472, %v189_v52 }
 0x14c   :  { %v83_v59 = vadd.f32 %v80_v53, %v75_v55 }
 0x14d   :  { %v191_v58 = vpop.eup %190 }
 0x14e   :  { %v82_v60 = vmul.f32 0.6931472, %v191_v58  ;;  %v100_v63 = vsel %vm98_vm1, %v83_v59, -inf }
 0x150   :  { %v84_v62 = vadd.f32 %v82_v60, %v76_v61 }
 0x152   :  { %v101_v0 = vsel %vm99_vm2, %v84_v62, -inf }
 0x153   :  { %v102_v1 = vmax.f32 %v100_v63, %v101_v0 }
 0x155   :  { %v103_v2 = vrot.slane %v102_v1, 4 }
 0x157   :  { %v104_v3 = vmax.f32 %v102_v1, %v103_v2 }
 0x159   :  { %v105_v4 = vrot.slane %v104_v3, 2 }
 0x15b   :  { %v106_v5 = vmax.f32 %v104_v3, %v105_v4 }
 0x15d   :  { %v107_v7 = vrot.slane %v106_v5, 1 }
 0x15f   :  { %v108_v8 = vmax.f32 %v106_v5, %v107_v7 }
 0x161   :  { %vm109_vm3 = vcmp.eq.f32.partialorder %v100_v63, %v108_v8  ;;  %vm110_vm4 = vcmp.eq.f32.partialorder %v101_v0, %v108_v8  ;;  %vm111_vm5 = vweird.f32 %v108_v8 }
 0x162   :  { %vm112_vm7 = vmxor %vm111_vm5, %vm193_vm6 }
 0x163   :  { %vm115_vm8 = vmand %vm109_vm3, %vm112_vm7 }
 0x164   :  { %vm116_vm9 = vmand %vm110_vm4, %vm112_vm7  ;;  %v117_v10 = vsel %vm115_vm8, %v88_v6, 16 }
 0x165   :  { %v118_v11 = vsel %vm116_vm9, %v89_v9, 16 }
 0x166   :  { %vm119_vm10 = vcmp.lt.s32.totalorder %v117_v10, %v118_v11 }
 0x167   :  { %v120_v12 = vsel %vm119_vm10, %v117_v10, %v118_v11 }
 0x168   :  { %v121_v13 = vrot.slane %v120_v12, 4 }
 0x16a   :  { %vm122_vm11 = vcmp.lt.s32.totalorder %v120_v12, %v121_v13 }
 0x16b   :  { %v123_v14 = vsel %vm122_vm11, %v120_v12, %v121_v13 }
 0x16c   :  { %v124_v15 = vrot.slane %v123_v14, 2 }
 0x16e   :  { %vm125_vm12 = vcmp.lt.s32.totalorder %v123_v14, %v124_v15 }
 0x16f   :  { %v126_v16 = vsel %vm125_vm12, %v123_v14, %v124_v15 }
 0x170   :  { %v127_v17 = vrot.slane %v126_v16, 1 }
 0x172   :  { %vm128_vm13 = vcmp.lt.s32.totalorder %v126_v16, %v127_v17 }
 0x173   :  { %v129_v18 = vsel %vm128_vm13, %v126_v16, %v127_v17 }
 0x174   :  { %vm130_vm14 = vcmp.eq.s32.totalorder %v88_v6, %v129_v18  ;;  %vm131_vm15 = vcmp.eq.s32.totalorder %v89_v9, %v129_v18 }
 0x175   :  { %v132_v19 = vsel %vm130_vm14, -inf, %v100_v63  ;;  %v133_v20 = vsel %vm131_vm15, -inf, %v101_v0 }
 0x176   :  { %v134_v21 = vmax.f32 %v132_v19, %v133_v20 }
 0x178   :  { %v135_v22 = vrot.slane %v134_v21, 4 }
 0x17a   :  { %v136_v23 = vmax.f32 %v134_v21, %v135_v22 }
 0x17c   :  { %v137_v24 = vrot.slane %v136_v23, 2 }
 0x17e   :  { %v138_v25 = vmax.f32 %v136_v23, %v137_v24 }
 0x180   :  { %v139_v26 = vrot.slane %v138_v25, 1 }
 0x182   :  { %v140_v27 = vmax.f32 %v138_v25, %v139_v26 }
 0x184   :  { %vm141_vm0 = vcmp.eq.f32.partialorder %v132_v19, %v140_v27  ;;  %vm142_vm1 = vcmp.eq.f32.partialorder %v133_v20, %v140_v27  ;;  %vm143_vm2 = vweird.f32 %v140_v27  ;;  %163 = vst [vmem:[%s258_s4] sm:$0x1] %v140_v27 }
 0x185   :  { %vm144_vm3 = vmxor %vm143_vm2, %vm193_vm6 }
 0x186   :  { %vm147_vm4 = vmand %vm141_vm0, %vm144_vm3 }
 0x187   :  { %vm148_vm5 = vmand %vm142_vm1, %vm144_vm3  ;;  %v149_v28 = vsel %vm147_vm4, %v88_v6, 16 }
 0x188   :  { %v150_v29 = vsel %vm148_vm5, %v89_v9, 16 }
 0x189   :  { %vm151_vm7 = vcmp.lt.s32.totalorder %v149_v28, %v150_v29 }
 0x18a   :  { %v152_v30 = vsel %vm151_vm7, %v149_v28, %v150_v29 }
 0x18b   :  { %v153_v31 = vrot.slane %v152_v30, 4 }
 0x18d   :  { %vm154_vm8 = vcmp.lt.s32.totalorder %v152_v30, %v153_v31 }
 0x18e   :  { %v155_v32 = vsel %vm154_vm8, %v152_v30, %v153_v31 }
 0x18f   :  { %v156_v33 = vrot.slane %v155_v32, 2 }
 0x191   :  { %vm157_vm9 = vcmp.lt.s32.totalorder %v155_v32, %v156_v33 }
 0x192   :  { %v158_v34 = vsel %vm157_vm9, %v155_v32, %v156_v33 }
 0x193   :  { %v159_v35 = vrot.slane %v158_v34, 1 }
 0x195   :  { %vm160_vm10 = vcmp.lt.s32.totalorder %v158_v34, %v159_v35 }
 0x196   :  { %v161_v36 = vsel %vm160_vm10, %v158_v34, %v159_v35 }
 0x197   :  { %162 = vst [vmem:[%s259_s3] sm:$0x1] %v161_v36 }

</bundles_post_ra>
